<compile_context>
chip_gen: v7x
topology: tpu7x:2x2x1
jax: 0.10.0
libtpu: 0.0.40
codegen_flags: <defaults>
</compile_context>

<pallas_src>
import functools

import jax
import jax.numpy as jnp
from jax.experimental import pallas as pl
from jax.experimental.pallas import tpu as pltpu

D_IN = 2
HIDDEN = 100
D_OUT = 5
HPAD = 128          # hidden padded to one full lane vreg
NPAD = 128          # output padded to one full lane vreg

# Packed-parameter slab layout (row offsets, all 8-aligned):
W1_ROW = 0          # rows 0..1    : w1 (D_IN, HPAD)
B1_ROW = 8          # row  8       : b1 (1, HPAD)
W2_ROW = 16         # rows 16..143 : w2 (HPAD, NPAD)
B2_ROW = 144        # row  144     : b2 (1, NPAD); pad lanes = NEG_BIG
PACK_ROWS = 152

NEG_BIG = -1e30


def policy_net_kernel(x_ref, p_ref, o_ref):
    x = x_ref[...]                              # (tb, D_IN) f32
    w1r0 = p_ref[W1_ROW:W1_ROW + 1, :]          # (1, HPAD)
    w1r1 = p_ref[W1_ROW + 1:W1_ROW + 2, :]      # (1, HPAD)
    b1 = p_ref[B1_ROW:B1_ROW + 1, :]            # (1, HPAD)
    w2 = p_ref[W2_ROW:W2_ROW + HPAD, :]         # (HPAD, NPAD), 8-aligned slice
    b2 = p_ref[B2_ROW:B2_ROW + 1, :]            # (1, NPAD)

    # ---- Linear(2, 100) + ReLU on the VPU: K=2 dot as two broadcast FMAs ----
    h = x[:, 0:1] * w1r0 + x[:, 1:2] * w1r1 + b1      # (tb, HPAD)
    h = jnp.maximum(h, 0.0)                           # pad lanes stay 0

    # ---- Linear(100, 5) on the MXU (padded 128x128, f32 accumulate) ----
    logits = jnp.dot(h, w2, preferred_element_type=jnp.float32) + b2

    # ---- Softmax over dim=1. Pad lanes carry b2 = -1e30 -> exp == 0. ----
    m = jnp.max(logits, axis=-1, keepdims=True)
    e = jnp.exp(logits - m)
    denom = jnp.sum(e, axis=-1, keepdims=True)
    r = pl.reciprocal(denom, approx=True)       # EUP slot (otherwise idle)
    r = r * (2.0 - denom * r)                   # one Newton step -> f32-accurate
    o_ref[...] = e * r                          # lane-dense (tb, 128) store


def pack_params(w1, b1, w2, b2):
    """Pack (in,out)-layout params into a single lane-dense (152,128) slab."""
    w1 = jnp.asarray(w1, jnp.float32).reshape(D_IN, HIDDEN)
    b1 = jnp.asarray(b1, jnp.float32).reshape(1, HIDDEN)
    w2 = jnp.asarray(w2, jnp.float32).reshape(HIDDEN, D_OUT)
    b2 = jnp.asarray(b2, jnp.float32).reshape(1, D_OUT)

    p = jnp.zeros((PACK_ROWS, NPAD), jnp.float32)
    p = p.at[W1_ROW:W1_ROW + D_IN, :HIDDEN].set(w1)
    p = p.at[B1_ROW, :HIDDEN].set(b1[0])
    p = p.at[W2_ROW:W2_ROW + HIDDEN, :D_OUT].set(w2)
    # Padded output lanes get a huge negative logit bias so softmax ignores them.
    p = p.at[B2_ROW, :].set(NEG_BIG)
    p = p.at[B2_ROW, :D_OUT].set(b2[0])
    return p


def _round_up(n, m):
    return (n + m - 1) // m * m


@functools.partial(jax.jit, static_argnames=("batch_tile",))
def policy_net_forward(x, packed_params, *, batch_tile=512):
    x = x.astype(jnp.float32)                   # mirrors x.type(torch.float32)
    B = x.shape[0]
    tb = min(batch_tile, _round_up(B, 8))       # batch tile, sublane-aligned
    Bp = _round_up(B, tb)
    if Bp != B:
        x = jnp.pad(x, ((0, Bp - B), (0, 0)))

    out = pl.pallas_call(
        policy_net_kernel,
        out_shape=jax.ShapeDtypeStruct((Bp, NPAD), jnp.float32),
        grid=(Bp // tb,),
        in_specs=[
            pl.BlockSpec((tb, D_IN), lambda i: (i, 0)),           # batch tile of x
            pl.BlockSpec((PACK_ROWS, NPAD), lambda i: (0, 0)),    # params resident
        ],
        out_specs=pl.BlockSpec((tb, NPAD), lambda i: (i, 0)),
        compiler_params=pltpu.CompilerParams(
            dimension_semantics=("parallel",)),                   # v7x: 2-TC split
        cost_estimate=pl.CostEstimate(
            flops=2 * Bp * (D_IN * HIDDEN + HIDDEN * D_OUT),
            transcendentals=Bp * NPAD,
            bytes_accessed=4 * (Bp * D_IN + PACK_ROWS * NPAD + Bp * NPAD),
        ),
    )(x, packed_params)
    return out[:B, :D_OUT]


def init_params(key, input_dim=D_IN, hidden=HIDDEN, output_dim=D_OUT):
    # Deterministic init mimicking nn.Linear's default U(-1/sqrt(fan_in), +1/sqrt(fan_in)).
    k1, k2, k3, k4 = jax.random.split(key, 4)
    lim1 = 1.0 / jnp.sqrt(jnp.float32(input_dim))
    lim2 = 1.0 / jnp.sqrt(jnp.float32(hidden))
    w1 = jax.random.uniform(k1, (input_dim, hidden), jnp.float32, -lim1, lim1)
    b1 = jax.random.uniform(k2, (1, hidden), jnp.float32, -lim1, lim1)
    w2 = jax.random.uniform(k3, (hidden, output_dim), jnp.float32, -lim2, lim2)
    b2 = jax.random.uniform(k4, (1, output_dim), jnp.float32, -lim2, lim2)
    return w1, b1, w2, b2


if __name__ == "__main__":
    key = jax.random.PRNGKey(0)
    k_param, k_x = jax.random.split(key)

    w1, b1, w2, b2 = init_params(k_param)
    packed = pack_params(w1, b1, w2, b2)

    batch = 2
    x = jax.random.normal(k_x, (batch, D_IN), jnp.float32)

    out = policy_net_forward(x, packed)
    out = jax.block_until_ready(out)

    # Sanity: shape + softmax rows sum to ~1.
    assert out.shape == (batch, D_OUT)
    assert jnp.allclose(jnp.sum(out, axis=1), 1.0, atol=1e-5)

    # Cross-check against a plain-JAX reference of the same forward pass.
    h_ref = jnp.maximum(x @ w1 + b1, 0.0)
    ref = jax.nn.softmax(h_ref @ w2 + b2, axis=1)
    assert jnp.allclose(out, ref, atol=1e-5), float(jnp.max(jnp.abs(out - ref)))

    # Exercise the tiled multi-block batch path once (ragged B, grid of 3).
    xb = jax.random.normal(jax.random.PRNGKey(1), (1037, D_IN), jnp.float32)
    outb = jax.block_until_ready(policy_net_forward(xb, packed, batch_tile=512))
    refb = jax.nn.softmax(jnp.maximum(xb @ w1 + b1, 0.0) @ w2 + b2, axis=1)
    assert outb.shape == (1037, D_OUT)
    assert jnp.allclose(outb, refb, atol=1e-5)

    print("KERNEL_OK")
</pallas_src>

<mosaic_0001>
module attributes {stable_mosaic.version = 11 : i64} {
  func.func @policy_net_kernel(%arg0: i32, %arg1: memref<8x2xf32, #tpu.memory_space<vmem>>, %arg2: memref<152x128xf32, #tpu.memory_space<vmem>>, %arg3: memref<8x128xf32, #tpu.memory_space<vmem>>) attributes {dimension_semantics = [#tpu.dimension_semantics<parallel>], iteration_bounds = array<i64: 1>, scalar_prefetch = 0 : i64, scratch_operands = 0 : i64, tpu.core_type = #tpu.core_type<tc>, window_params = [{transform_indices = @transform_0, window_bounds = array<i64: 8, 2>}, {pipeline_mode = #tpu.pipeline_mode<synchronous>, transform_indices = @transform_1, window_bounds = array<i64: 152, 128>}, {transform_indices = @transform_2, window_bounds = array<i64: 8, 128>}]} {
    %c0 = arith.constant 0 : index
    %c0_0 = arith.constant 0 : index
    %0 = vector.load %arg1[%c0, %c0_0] : memref<8x2xf32, #tpu.memory_space<vmem>>, vector<8x2xf32>
    %c0_1 = arith.constant 0 : index
    %c0_2 = arith.constant 0 : index
    %1 = vector.load %arg2[%c0_1, %c0_2] : memref<152x128xf32, #tpu.memory_space<vmem>>, vector<1x128xf32>
    %c1 = arith.constant 1 : index
    %c0_3 = arith.constant 0 : index
    %2 = vector.load %arg2[%c1, %c0_3] : memref<152x128xf32, #tpu.memory_space<vmem>>, vector<1x128xf32>
    %c8 = arith.constant 8 : index
    %c0_4 = arith.constant 0 : index
    %3 = vector.load %arg2[%c8, %c0_4] : memref<152x128xf32, #tpu.memory_space<vmem>>, vector<1x128xf32>
    %c16 = arith.constant 16 : index
    %c0_5 = arith.constant 0 : index
    %4 = vector.load %arg2[%c16, %c0_5] : memref<152x128xf32, #tpu.memory_space<vmem>>, vector<128x128xf32>
    %c144 = arith.constant 144 : index
    %c0_6 = arith.constant 0 : index
    %5 = vector.load %arg2[%c144, %c0_6] : memref<152x128xf32, #tpu.memory_space<vmem>>, vector<1x128xf32>
    %6 = vector.extract_strided_slice %0 {offsets = [0, 0], sizes = [8, 1], strides = [1, 1]} : vector<8x2xf32> to vector<8x1xf32>
    %7 = vector.broadcast %6 : vector<8x1xf32> to vector<8x128xf32>
    %8 = vector.broadcast %1 : vector<1x128xf32> to vector<8x128xf32>
    %9 = arith.mulf %7, %8 : vector<8x128xf32>
    %10 = vector.extract_strided_slice %0 {offsets = [0, 1], sizes = [8, 1], strides = [1, 1]} : vector<8x2xf32> to vector<8x1xf32>
    %11 = vector.broadcast %10 : vector<8x1xf32> to vector<8x128xf32>
    %12 = vector.broadcast %2 : vector<1x128xf32> to vector<8x128xf32>
    %13 = arith.mulf %11, %12 : vector<8x128xf32>
    %14 = arith.addf %9, %13 : vector<8x128xf32>
    %15 = vector.broadcast %3 : vector<1x128xf32> to vector<8x128xf32>
    %16 = arith.addf %14, %15 : vector<8x128xf32>
    %cst = arith.constant 0.000000e+00 : f32
    %17 = vector.broadcast %cst : f32 to vector<8x128xf32>
    %18 = arith.maximumf %16, %17 : vector<8x128xf32>
    %cst_7 = arith.constant dense<0.000000e+00> : vector<8x128xf32>
    %19 = tpu.matmul %18, %4, %cst_7 {dimension_numbers = #tpu.dot_dimension_numbers<[1], [0], [0], [1], [0, 0, 1, 1], [], []>} : vector<8x128xf32>, vector<128x128xf32>, vector<8x128xf32> -> vector<8x128xf32>
    %20 = vector.broadcast %5 : vector<1x128xf32> to vector<8x128xf32>
    %21 = arith.addf %19, %20 : vector<8x128xf32>
    %cst_8 = arith.constant dense<0xFF800000> : vector<8xf32>
    %22 = vector.multi_reduction <maximumf>, %21, %cst_8 [1] : vector<8x128xf32> to vector<8xf32>
    %23 = vector.shape_cast %22 : vector<8xf32> to vector<8x1xf32>
    %24 = vector.broadcast %23 : vector<8x1xf32> to vector<8x128xf32>
    %25 = arith.subf %21, %24 : vector<8x128xf32>
    %26 = math.exp %25 : vector<8x128xf32>
    %cst_9 = arith.constant dense<0.000000e+00> : vector<8xf32>
    %27 = vector.multi_reduction <add>, %26, %cst_9 [1] : vector<8x128xf32> to vector<8xf32>
    %28 = vector.shape_cast %27 : vector<8xf32> to vector<8x1xf32>
    %29 = tpu.reciprocal %28 {approx = true} : vector<8x1xf32> -> vector<8x1xf32>
    %30 = arith.mulf %28, %29 : vector<8x1xf32>
    %cst_10 = arith.constant 2.000000e+00 : f32
    %31 = vector.broadcast %cst_10 : f32 to vector<8x1xf32>
    %32 = arith.subf %31, %30 : vector<8x1xf32>
    %33 = arith.mulf %29, %32 : vector<8x1xf32>
    %34 = vector.broadcast %33 : vector<8x1xf32> to vector<8x128xf32>
    %35 = arith.mulf %26, %34 : vector<8x128xf32>
    %c0_11 = arith.constant 0 : index
    %c0_12 = arith.constant 0 : index
    %36 = vector.load %arg3[%c0_11, %c0_12] : memref<8x128xf32, #tpu.memory_space<vmem>>, vector<8x128xf32>
    tpu.vector_store %arg3[%c0_11, %c0_12], %35 {strides = array<i32>} : memref<8x128xf32, #tpu.memory_space<vmem>>, vector<8x128xf32>,
    return
  }
  func.func @transform_0(%arg0: i32) -> (i32, i32) {
    %c0_i32 = arith.constant 0 : i32
    %c0_i32_0 = arith.constant 0 : i32
    return %arg0, %c0_i32 : i32, i32
  }
  func.func @transform_1(%arg0: i32) -> (i32, i32) {
    %c0_i32 = arith.constant 0 : i32
    %c0_i32_0 = arith.constant 0 : i32
    %c0_i32_1 = arith.constant 0 : i32
    return %c0_i32, %c0_i32_0 : i32, i32
  }
  func.func @transform_2(%arg0: i32) -> (i32, i32) {
    %c0_i32 = arith.constant 0 : i32
    %c0_i32_0 = arith.constant 0 : i32
    return %arg0, %c0_i32 : i32, i32
  }
}

</mosaic_0001>

<bundles_post_ra>
// kernel: policy_net_forward.1
= control target key start
LH: loop header
LB: loop body
LE: loop exit
PB: predicated region body
PF: predicated region fallthrough
CT: control target
= control target key end

     0   :  { %7 = vsyncpa [#allocation3], 0  ;;  %s282_s9 = smov [#allocation2]   ;;  %s323_s0 = inlined_call_operand.vmem [shape: f32[8,2], index: 0, kind: input, shape index: {}]   ;;  %s324_s1 = inlined_call_operand.hbm [shape: f32[152,128], index: 1, kind: input, shape index: {}]   ;;  %s325_s2 = inlined_call_operand.vmem [shape: f32[8,128], index: 2, kind: output, shape index: {}]  }
   0x1   :  { %s15_s10 = sshll.u32 %s282_s9, 4  ;;  %s258_s13 = scalar_lea.hbm %s324_s1, 2432  ;;  %s16_s10 = int_to_ptr.vmem [resolvable:$true] %s15_s10 }
   0x2   :  { %p259_p0 = scmp.ne.s32.totalorder %s324_s1, %s258_s13  ;;  %p262_p1 = scmp.lt.u32.totalorder %s258_s13, %s324_s1 }
   0x4   :  { %p264_p2 = pnand %p262_p1, %p259_p0 }
   0x6   :  { %267 = shalt.err (!%p264_p2)
}
   0x7   :  { %s268_s18 = scalar_lea.vmem %s16_s10, 2432  ;;  %p273_p4 = scmp.lt.s32.totalorder %s16_s10, %s16_s10 }
   0x8   :  { %p269_p3 = scmp.ne.s32.totalorder %s16_s10, %s268_s18  ;;  %p274_p5 = scmp.lt.s32.totalorder %s268_s18, %s268_s18 }
   0xa   :  { %p275_p6 = por %p274_p5, %p273_p4 }
   0xc   :  { %p276_p7 = pnand %p275_p6, %p269_p3 }
   0xe   :  { %279 = shalt.err (!%p276_p7)
}
   0xf   :  { %s283_s19 = smov 128   ;;  %s284_s20 = smov 8  }
  0x10   :  { %21 = dma.hbm_to_vmem [thread:$0]  %s324_s1, 2432, %s16_s10, [#allocation3], %s283_s19, %s283_s19, %s284_s20  }
  0x11   :  { %280 = dma.done.wait [#allocation3], 2432  }
  0x12   :  { %281 = vsyncadd [#allocation3], 4294964864  ;;  %v285_v0 = vmov 0   ;;  %v286_v1 = vmov 0.0|0.0   ;;  %v25_v2 = vld [vmem:[%s323_s0] sm:$0xff]  ;;  %v29_v3 = vld [vmem:[#allocation2 + $0x10] sm:$0xff] }
  0x13   :  { %252 = vset.pattern.permute.xlu0 %v285_v0  ;;  %220 = vmatprep.subr.bf16.mxu0 %v286_v1  ;;  %v30_v4 = vld [vmem:[#allocation2 + $0x18] sm:$0xff]  ;;  %v31_v6 = vld [vmem:[#allocation2 + $0x20] sm:$0xff]  ;;  %v32_v7 = vld [vmem:[#allocation2 + $0x28] sm:$0xff]  ;;  %v287_v11 = vmov 1   ;;  %vm288_vm0 = vmmov 0   ;;  %v289_v15 = vmov 0.0  }
  0x14   :  { %48 = vperm.xlu0 %252, %v25_v2   ;;  %v221_v5 = vpack.c.bf16 %v30_v4, %v29_v3  ;;  %v224_v8 = vpack.c.bf16 %v32_v7, %v31_v6  ;;  %v33_v9 = vld [vmem:[#allocation2 + $0x30] sm:$0xff]  ;;  %v34_v10 = vld [vmem:[#allocation2 + $0x38] sm:$0xff]  ;;  %v35_v13 = vld [vmem:[#allocation2 + $0x40] sm:$0xff]  ;;  %217 = vmatprep.mubr.msk.f32.mxu0 %vm288_vm0, %v289_v15 }
  0x15   :  { %v227_v12 = vpack.c.bf16 %v34_v10, %v33_v9  ;;  %v36_v14 = vld [vmem:[#allocation2 + $0x48] sm:$0xff]  ;;  %v37_v17 = vld [vmem:[#allocation2 + $0x50] sm:$0xff]  ;;  %v38_v18 = vld [vmem:[#allocation2 + $0x58] sm:$0xff] }
  0x16   :  { %222 = vmatpush3.bf16.msra.mxu0 %v221_v5  ;;  %v230_v16 = vpack.c.bf16 %v36_v14, %v35_v13  ;;  %v233_v19 = vpack.c.bf16 %v38_v18, %v37_v17  ;;  %v39_v20 = vld [vmem:[#allocation2 + $0x60] sm:$0xff]  ;;  %v40_v21 = vld [vmem:[#allocation2 + $0x68] sm:$0xff]  ;;  %v41_v23 = vld [vmem:[#allocation2 + $0x70] sm:$0xff] }
  0x17   :  { %223 = vmatprep.subr.bf16.mxu0 %v286_v1  ;;  %v236_v22 = vpack.c.bf16 %v40_v21, %v39_v20  ;;  %v42_v24 = vld [vmem:[#allocation2 + $0x78] sm:$0xff]  ;;  %v43_v26 = vld [vmem:[#allocation2 + $0x80] sm:$0xff]  ;;  %v44_v27 = vld [vmem:[#allocation2 + $0x88] sm:$0xff] }
  0x18   :  { %253 = vset.pattern.permute.xlu0 %v287_v11  ;;  %v239_v25 = vpack.c.bf16 %v42_v24, %v41_v23  ;;  %v242_v28 = vpack.c.bf16 %v44_v27, %v43_v26  ;;  %v164_v30 = vld [vmem:[#allocation2] ss:$0 sm:$0xff]  ;;  %v165_v31 = vld [vmem:[#allocation2 + $0x1] ss:$0 sm:$0xff]  ;;  %v166_v35 = vld [vmem:[#allocation2 + $0x8] ss:$0 sm:$0xff] }
  0x19   :  { %57 = vperm.xlu0 %253, %v25_v2   ;;  %v167_v39 = vld [vmem:[#allocation2 + $0x90] ss:$0 sm:$0xff] }
  0x1a   :  { %225 = vmatpush3.bf16.msra.mxu0 %v224_v8 }
  0x1b   :  { %226 = vmatprep.subr.bf16.mxu0 %v286_v1 }
  0x1e   :  { %228 = vmatpush3.bf16.msra.mxu0 %v227_v12 }
  0x1f   :  { %229 = vmatprep.subr.bf16.mxu0 %v286_v1 }
  0x22   :  { %231 = vmatpush3.bf16.msra.mxu0 %v230_v16 }
  0x23   :  { %232 = vmatprep.subr.bf16.mxu0 %v286_v1 }
  0x26   :  { %234 = vmatpush3.bf16.msra.mxu0 %v233_v19 }
  0x27   :  { %235 = vmatprep.subr.bf16.mxu0 %v286_v1 }
  0x2a   :  { %237 = vmatpush3.bf16.msra.mxu0 %v236_v22 }
  0x2b   :  { %238 = vmatprep.subr.bf16.mxu0 %v286_v1 }
  0x2e   :  { %240 = vmatpush3.bf16.msra.mxu0 %v239_v25 }
  0x2f   :  { %241 = vmatprep.subr.bf16.mxu0 %v286_v1 }
  0x32   :  { %243 = vmatpush3.bf16.msra.mxu0 %v242_v28 }
  0x93   :  { %v49_v29 = vpop.permute.xlu0 %48 }
  0x94   :  { %v55_v33 = vmul.f32 %v164_v30, %v49_v29 }
  0x98   :  { %v58_v32 = vpop.permute.xlu0 %57 }
  0x99   :  { %v64_v34 = vmul.f32 %v165_v31, %v58_v32 }
  0x9b   :  { %v65_v36 = vadd.f32 %v64_v34, %v55_v33 }
  0x9d   :  { %v70_v37 = vadd.f32 %v166_v35, %v65_v36 }
  0x9f   :  { %v71_v38 = vmax.f32 %v70_v37, 0.0 }
  0xa1   :  { %218 = vmatmul.mubr.f32.vlgmr.msra.gmra.mrb[0].mxu0 %v71_v38 }
 0x174   :  { %v142_v40 = vpop.f32.mrb[0].mxu0 }
 0x175   :  { %v143_v41 = vadd.f32 %v167_v39, %v142_v40  ;;  %v219_v42 = vpop.f32.mrb[1].mxu0 }
 0x177   :  { %146 = vmax.xlane.f32.xlu1 %v143_v41 }
 0x204   :  { %v147_v43 = vpop.xlane.xlu1 %146 }
 0x205   :  { %v148_v44 = vsub.f32 %v143_v41, %v147_v43 }
 0x207   :  { %v149_v45 = vmul.f32 1.442695, %v148_v44 }
 0x209   :  { %254 = vpow2.f32 %v149_v45 }
 0x213   :  { %v255_v46 = vpop.eup %254 }
 0x214   :  { %151 = vadd.xlane.f32.xlu1 %v255_v46 }
 0x2a1   :  { %v152_v47 = vpop.xlane.xlu1 %151 }
 0x2a2   :  { %256 = vrcp.f32 %v152_v47 }
 0x2ac   :  { %v257_v48 = vpop.eup %256 }
 0x2ad   :  { %v154_v49 = vmul.f32 %v257_v48, %v152_v47 }
 0x2af   :  { %v155_v50 = vsub.f32 2.0, %v154_v49 }
 0x2b1   :  { %v156_v51 = vmul.f32 %v257_v48, %v155_v50 }
 0x2b3   :  { %v157_v52 = vmul.f32 %v255_v46, %v156_v51 }
 0x2b5   :  { %158 = vst [vmem:[%s325_s2] sm:$0xff] %v157_v52 }
 0x2b6   :  { %163 = vsyncpa [#allocation3], 1 }

</bundles_post_ra>
